<compile_context>
chip_gen: v7x
topology: tpu7x:2x2x1
jax: 0.10.0
libtpu: 0.0.40
codegen_flags: <defaults>
</compile_context>

<pallas_src>
import numpy as np
import jax
import jax.numpy as jnp
from jax.experimental import pallas as pl
from jax.experimental.pallas import tpu as pltpu


BC = 128          # lane granularity (batch elements per 128-lane chunk)
CPB_MAX = 8       # max lane-chunks per grid step  -> up to 1024 batch rows / step
KP = 128          # K dim of the conv Toeplitz matmul: 3*36 pixels + 1 bias col, zero-padded


# ----------------------------------------------------------------------------- kernel
def cnn_lf_kernel(x_ref, x3_ref, wconv_ref, w1bd_ref, vec_ref, mcat_ref, out_ref):
    # x_ref    : (KP, Nb) bf16   rows = [br0 36px, br1 36px, br2 36px, ones, 0...]; batch on lanes
    # x3_ref   : (1, Nb)  f32
    # wconv_ref: (4, 216, KP) bf16   per-pool-quadrant Toeplitz (conv weights + bias col)
    # w1bd_ref : (48, 216) bf16      block-diagonal fc1 (shared weights, 3 branch blocks)
    # vec_ref  : (48, 8)  f32        col0=b1(x3 stacked), col1=W3[3], col2=fused fc3 bias,
    #                                col3=regressor weight, [0,4]=regressor bias
    # mcat_ref : (16, 48) f32        fused fc2+fc3 weight
    # out_ref  : (1, Nb)  f32        lane-dense output
    xb = x_ref[...]                                        # (KP, Nb) bf16

    # Conv (+bias) for all 3 branches, one MXU matmul per pool quadrant; MaxPool is the
    # elementwise max over the 4 quadrant results; ReLU commutes with max.
    m01 = jnp.maximum(
        jnp.dot(wconv_ref[0], xb, preferred_element_type=jnp.float32),
        jnp.dot(wconv_ref[1], xb, preferred_element_type=jnp.float32))
    m23 = jnp.maximum(
        jnp.dot(wconv_ref[2], xb, preferred_element_type=jnp.float32),
        jnp.dot(wconv_ref[3], xb, preferred_element_type=jnp.float32))
    pooled = jnp.maximum(jnp.maximum(m01, m23), 0.0)       # (216, Nb) f32, rows br*72+p*8+c

    vec = vec_ref[...]                                     # (48, 8)
    b1 = vec[:, 0:1]                                       # (48, 1)
    w3x = vec[:16, 1:2]                                    # (16, 1)  W3 column for x3
    b3f = vec[:16, 2:3]                                    # (16, 1)  b3 + b2 * sum_br W3[br]
    wr = vec[:16, 3:4]                                     # (16, 1)  regressor weight
    brv = vec[0:1, 4:5]                                    # (1, 1)   regressor bias

    # fc1 for all branches: one block-diagonal bf16 matmul, bias add, ReLU.
    h = jnp.dot(w1bd_ref[...], pooled.astype(jnp.bfloat16),
                preferred_element_type=jnp.float32) + b1
    h = jnp.maximum(h, 0.0)                                # (48, Nb)

    # fused fc2 + fc3 (+ rank-1 x3 term), ReLU.
    x3r = x3_ref[...]                                      # (1, Nb)
    h3 = jnp.dot(mcat_ref[...], h, preferred_element_type=jnp.float32) + w3x * x3r + b3f
    h3 = jnp.maximum(h3, 0.0)                              # (16, Nb)

    # regressor 16 -> 1 as a sublane reduction (XLU has slack), lane-dense store.
    out = jnp.sum(h3 * wr, axis=0, keepdims=True) + brv    # (1, Nb)
    out_ref[...] = out.astype(out_ref.dtype)


# ----------------------------------------------------------------------------- wrapper
def _resident(shape):
    """Full-array BlockSpec with a constant index_map (stays VMEM-resident)."""
    nd = len(shape)
    return pl.BlockSpec(shape, lambda i, _nd=nd: (0,) * _nd)


def _conv_toeplitz(p):
    """Build (4, 216, KP) bf16: per-quadrant conv+bias Toeplitz, rows br*72 + p*8 + c."""
    tap_map = np.zeros((4, 9, 36), np.int32)
    tap_msk = np.zeros((4, 9, 36), np.float32)
    for q in range(4):
        qi, qj = divmod(q, 2)
        for pp in range(9):
            ph, pw = divmod(pp, 3)
            oh, ow = 2 * ph + qi, 2 * pw + qj
            for ih in range(6):
                for iw in range(6):
                    di, dj = ih - oh + 1, iw - ow + 1
                    if 0 <= di < 3 and 0 <= dj < 3:
                        tap_map[q, pp, ih * 6 + iw] = di * 3 + dj
                        tap_msk[q, pp, ih * 6 + iw] = 1.0
    tap_map_j = jnp.asarray(tap_map)
    mask_j = jnp.asarray(tap_msk)

    W = jnp.zeros((4, 3, 9, 8, KP), jnp.float32)
    for br in range(3):
        wtaps = p[f"Wc{br}"][:, 0].reshape(8, 9)                         # (out_ch, tap)
        g = jnp.take(wtaps, tap_map_j, axis=1)                           # (8,4,9,36)
        g = jnp.transpose(g, (1, 2, 0, 3)) * mask_j[:, :, None, :]       # (4,9,8,36)
        W = W.at[:, br, :, :, 36 * br:36 * (br + 1)].set(g)
        W = W.at[:, br, :, :, 108].set(
            jnp.broadcast_to(p[f"bc{br}"].reshape(1, 1, 8), (4, 9, 8)))  # bias via ones col
    return W.reshape(4, 216, KP).astype(jnp.bfloat16)


def _prep_weights(p):
    wconv = _conv_toeplitz(p)

    # fc1: PyTorch flatten order f = c*9 + p  ->  pooled order p*8 + c, transposed,
    # then block-diagonalized over the 3 branches.
    w1t = p["W1"].reshape(8, 9, 16).transpose(1, 0, 2).reshape(72, 16).T       # (16, 72)
    w1bd = jnp.zeros((48, 216), jnp.float32)
    for br in range(3):
        w1bd = w1bd.at[16 * br:16 * (br + 1), 72 * br:72 * (br + 1)].set(w1t)
    w1bd = w1bd.astype(jnp.bfloat16)

    # fc2+fc3 fused:  h3_pre = sum_br outer(W3[br], W2) @ h_br + W3[3]*x3 + (b3 + b2*sum W3[br])
    W2, W3, b2, b3 = p["W2"], p["W3"], p["b2"], p["b3"]
    mcat = jnp.concatenate([jnp.outer(W3[br], W2[:, 0]) for br in range(3)], axis=1)  # (16,48)
    b3f = b3.reshape(16, 1) + b2[0] * (W3[0] + W3[1] + W3[2]).reshape(16, 1)

    vec = jnp.zeros((48, 8), jnp.float32)
    vec = vec.at[:, 0:1].set(jnp.tile(p["b1"].reshape(16, 1), (3, 1)))   # b1 stacked
    vec = vec.at[:16, 1:2].set(W3[3].reshape(16, 1))                     # x3 weight column
    vec = vec.at[:16, 2:3].set(b3f)                                      # fused fc3 bias
    vec = vec.at[:16, 3:4].set(p["Wr"].reshape(16, 1))                   # regressor weight
    vec = vec.at[0, 4].set(p["br"][0])                                   # regressor bias
    return wconv, w1bd, vec, mcat


def cnn_lf_forward(x0, x1, x2, x3, p):
    B = x0.shape[0]
    # Batch block: large enough to amortize the ~0.35us/step overhead, but small enough
    # that big batches still split into >= 2 grid blocks (both v7x TensorCores stay fed).
    cpb = max(1, min(CPB_MAX, -(-B // (2 * BC))))
    block_b = cpb * BC
    nblocks = -(-B // block_b)
    Bpad = nblocks * block_b

    def flat(x):                                    # (B,1,6,6) -> (B,36), row-major pixels
        return x[:, 0].astype(jnp.float32).reshape(x.shape[0], 36)

    # Input slab: (KP, Bpad) bf16; rows = [br0 px, br1 px, br2 px, ones (bias), zeros...].
    xrows = jnp.concatenate(
        [flat(x0), flat(x1), flat(x2), jnp.ones((B, 1), jnp.float32)], axis=1)   # (B,109)
    xrows = jnp.pad(xrows, ((0, Bpad - B), (0, KP - 109)))
    xk = xrows.T.astype(jnp.bfloat16)                                            # (KP, Bpad)

    x3p = jnp.pad(x3.astype(jnp.float32), ((0, Bpad - B), (0, 0))).T             # (1, Bpad)

    wconv, w1bd, vec, mcat = _prep_weights(p)
    args = (xk, x3p, wconv, w1bd, vec, mcat)

    out = pl.pallas_call(
        cnn_lf_kernel,
        out_shape=jax.ShapeDtypeStruct((1, Bpad), jnp.float32),
        grid=(nblocks,),
        in_specs=[
            pl.BlockSpec((KP, block_b), lambda i: (0, i)),   # streamed input slab
            pl.BlockSpec((1, block_b), lambda i: (0, i)),    # streamed x3
            _resident(wconv.shape),                          # VMEM-resident weights
            _resident(w1bd.shape),
            _resident(vec.shape),
            _resident(mcat.shape),
        ],
        out_specs=pl.BlockSpec((1, block_b), lambda i: (0, i)),
        compiler_params=pltpu.CompilerParams(
            dimension_semantics=("parallel",),               # megacore sharding
            vmem_limit_bytes=32 * 1024 * 1024),
    )(*args)

    return out[0, :B, None]                                  # drop padded lanes -> (B, 1)


# ----------------------------------------------------------------------------- reference (plain JAX)
def ref_forward(x0, x1, x2, x3, p):
    def feat(x, W, b):
        y = jax.lax.conv_general_dilated(
            x, W, window_strides=(1, 1), padding=((1, 1), (1, 1)),
            dimension_numbers=("NCHW", "OIHW", "NCHW"))
        y = y + b[None, :, None, None]
        y = jax.lax.reduce_window(y, -jnp.inf, jax.lax.max,
                                  (1, 1, 2, 2), (1, 1, 2, 2), "VALID")
        return jnp.maximum(y, 0.0)

    def branch_fc(h):
        h = h.reshape(h.shape[0], -1)                # torch .view(B,-1): (c, h, w) order
        h = jnp.maximum(h @ p["W1"] + p["b1"], 0.0)
        return h @ p["W2"] + p["b2"]

    s0 = branch_fc(feat(x0, p["Wc0"], p["bc0"]))
    s1 = branch_fc(feat(x1, p["Wc1"], p["bc1"]))
    s2 = branch_fc(feat(x2, p["Wc2"], p["bc2"]))
    x = jnp.concatenate([s0, s1, s2, x3], axis=1)
    h = jnp.maximum(x @ p["W3"] + p["b3"], 0.0)
    return h @ p["Wr"] + p["br"]


# ----------------------------------------------------------------------------- params
def init_params(key):
    ks = jax.random.split(key, 14)

    def u(k, shape, fan_in):                         # PyTorch-style U(-1/sqrt(fan_in), +)
        bound = 1.0 / float(fan_in) ** 0.5
        return jax.random.uniform(k, shape, jnp.float32, -bound, bound)

    return dict(
        Wc0=u(ks[0], (8, 1, 3, 3), 9), bc0=u(ks[1], (8,), 9),
        Wc1=u(ks[2], (8, 1, 3, 3), 9), bc1=u(ks[3], (8,), 9),
        Wc2=u(ks[4], (8, 1, 3, 3), 9), bc2=u(ks[5], (8,), 9),
        W1=u(ks[6], (72, 16), 72), b1=u(ks[7], (16,), 72),
        W2=u(ks[8], (16, 1), 16), b2=u(ks[9], (1,), 16),
        W3=u(ks[10], (4, 16), 4), b3=u(ks[11], (16,), 4),
        Wr=u(ks[12], (16, 1), 16), br=u(ks[13], (1,), 16),
    )


# ----------------------------------------------------------------------------- main
if __name__ == "__main__":
    key = jax.random.PRNGKey(0)
    kp, k0, k1, k2, k3 = jax.random.split(key, 5)
    params = init_params(kp)

    B = 2
    x0 = jax.random.normal(k0, (B, 1, 6, 6), jnp.float32)
    x1 = jax.random.normal(k1, (B, 1, 6, 6), jnp.float32)
    x2 = jax.random.normal(k2, (B, 1, 6, 6), jnp.float32)
    x3 = jax.random.normal(k3, (B, 1), jnp.float32)

    out = cnn_lf_forward(x0, x1, x2, x3, params)
    out = jax.block_until_ready(out)

    ref = jax.block_until_ready(ref_forward(x0, x1, x2, x3, params))
    assert out.shape == (B, 1)
    # conv + fc1 run in bf16 (f32 accumulation) -> loosened tolerance per review.
    assert jnp.allclose(out, ref, atol=2e-2, rtol=2e-2), (out, ref)

    print("KERNEL_OK")
</pallas_src>

<mosaic_0001>
module attributes {stable_mosaic.version = 11 : i64} {
  func.func @cnn_lf_kernel(%arg0: i32, %arg1: memref<128x128xbf16, #tpu.memory_space<vmem>>, %arg2: memref<1x128xf32, #tpu.memory_space<vmem>>, %arg3: memref<4x216x128xbf16, #tpu.memory_space<vmem>>, %arg4: memref<48x216xbf16, #tpu.memory_space<vmem>>, %arg5: memref<48x8xf32, #tpu.memory_space<vmem>>, %arg6: memref<16x48xf32, #tpu.memory_space<vmem>>, %arg7: memref<1x128xf32, #tpu.memory_space<vmem>>) attributes {dimension_semantics = [#tpu.dimension_semantics<parallel>], iteration_bounds = array<i64: 1>, scalar_prefetch = 0 : i64, scratch_operands = 0 : i64, tpu.core_type = #tpu.core_type<tc>, window_params = [{transform_indices = @transform_0, window_bounds = array<i64: 128, 128>}, {transform_indices = @transform_1, window_bounds = array<i64: 1, 128>}, {pipeline_mode = #tpu.pipeline_mode<synchronous>, transform_indices = @transform_2, window_bounds = array<i64: 4, 216, 128>}, {pipeline_mode = #tpu.pipeline_mode<synchronous>, transform_indices = @transform_3, window_bounds = array<i64: 48, 216>}, {pipeline_mode = #tpu.pipeline_mode<synchronous>, transform_indices = @transform_4, window_bounds = array<i64: 48, 8>}, {pipeline_mode = #tpu.pipeline_mode<synchronous>, transform_indices = @transform_5, window_bounds = array<i64: 16, 48>}, {transform_indices = @transform_6, window_bounds = array<i64: 1, 128>}]} {
    %c0 = arith.constant 0 : index
    %c0_0 = arith.constant 0 : index
    %0 = vector.load %arg1[%c0, %c0_0] : memref<128x128xbf16, #tpu.memory_space<vmem>>, vector<128x128xbf16>
    %c0_1 = arith.constant 0 : index
    %c0_2 = arith.constant 0 : index
    %c0_3 = arith.constant 0 : index
    %1 = vector.load %arg3[%c0_1, %c0_2, %c0_3] : memref<4x216x128xbf16, #tpu.memory_space<vmem>>, vector<1x216x128xbf16>
    %2 = vector.shape_cast %1 : vector<1x216x128xbf16> to vector<216x128xbf16>
    %cst = arith.constant dense<0.000000e+00> : vector<216x128xf32>
    %3 = tpu.matmul %2, %0, %cst {dimension_numbers = #tpu.dot_dimension_numbers<[1], [0], [0], [1], [0, 0, 1, 1], [], []>} : vector<216x128xbf16>, vector<128x128xbf16>, vector<216x128xf32> -> vector<216x128xf32>
    %c1 = arith.constant 1 : index
    %c0_4 = arith.constant 0 : index
    %c0_5 = arith.constant 0 : index
    %4 = vector.load %arg3[%c1, %c0_4, %c0_5] : memref<4x216x128xbf16, #tpu.memory_space<vmem>>, vector<1x216x128xbf16>
    %5 = vector.shape_cast %4 : vector<1x216x128xbf16> to vector<216x128xbf16>
    %cst_6 = arith.constant dense<0.000000e+00> : vector<216x128xf32>
    %6 = tpu.matmul %5, %0, %cst_6 {dimension_numbers = #tpu.dot_dimension_numbers<[1], [0], [0], [1], [0, 0, 1, 1], [], []>} : vector<216x128xbf16>, vector<128x128xbf16>, vector<216x128xf32> -> vector<216x128xf32>
    %7 = arith.maximumf %3, %6 : vector<216x128xf32>
    %c2 = arith.constant 2 : index
    %c0_7 = arith.constant 0 : index
    %c0_8 = arith.constant 0 : index
    %8 = vector.load %arg3[%c2, %c0_7, %c0_8] : memref<4x216x128xbf16, #tpu.memory_space<vmem>>, vector<1x216x128xbf16>
    %9 = vector.shape_cast %8 : vector<1x216x128xbf16> to vector<216x128xbf16>
    %cst_9 = arith.constant dense<0.000000e+00> : vector<216x128xf32>
    %10 = tpu.matmul %9, %0, %cst_9 {dimension_numbers = #tpu.dot_dimension_numbers<[1], [0], [0], [1], [0, 0, 1, 1], [], []>} : vector<216x128xbf16>, vector<128x128xbf16>, vector<216x128xf32> -> vector<216x128xf32>
    %c3 = arith.constant 3 : index
    %c0_10 = arith.constant 0 : index
    %c0_11 = arith.constant 0 : index
    %11 = vector.load %arg3[%c3, %c0_10, %c0_11] : memref<4x216x128xbf16, #tpu.memory_space<vmem>>, vector<1x216x128xbf16>
    %12 = vector.shape_cast %11 : vector<1x216x128xbf16> to vector<216x128xbf16>
    %cst_12 = arith.constant dense<0.000000e+00> : vector<216x128xf32>
    %13 = tpu.matmul %12, %0, %cst_12 {dimension_numbers = #tpu.dot_dimension_numbers<[1], [0], [0], [1], [0, 0, 1, 1], [], []>} : vector<216x128xbf16>, vector<128x128xbf16>, vector<216x128xf32> -> vector<216x128xf32>
    %14 = arith.maximumf %10, %13 : vector<216x128xf32>
    %15 = arith.maximumf %7, %14 : vector<216x128xf32>
    %cst_13 = arith.constant 0.000000e+00 : f32
    %16 = vector.broadcast %cst_13 : f32 to vector<216x128xf32>
    %17 = arith.maximumf %15, %16 : vector<216x128xf32>
    %c0_14 = arith.constant 0 : index
    %c0_15 = arith.constant 0 : index
    %18 = vector.load %arg5[%c0_14, %c0_15] : memref<48x8xf32, #tpu.memory_space<vmem>>, vector<48x8xf32>
    %19 = vector.extract_strided_slice %18 {offsets = [0, 0], sizes = [48, 1], strides = [1, 1]} : vector<48x8xf32> to vector<48x1xf32>
    %20 = vector.extract_strided_slice %18 {offsets = [0, 1], sizes = [16, 1], strides = [1, 1]} : vector<48x8xf32> to vector<16x1xf32>
    %21 = vector.extract_strided_slice %18 {offsets = [0, 2], sizes = [16, 1], strides = [1, 1]} : vector<48x8xf32> to vector<16x1xf32>
    %22 = vector.extract_strided_slice %18 {offsets = [0, 3], sizes = [16, 1], strides = [1, 1]} : vector<48x8xf32> to vector<16x1xf32>
    %23 = vector.extract_strided_slice %18 {offsets = [0, 4], sizes = [1, 1], strides = [1, 1]} : vector<48x8xf32> to vector<1x1xf32>
    %c0_16 = arith.constant 0 : index
    %c0_17 = arith.constant 0 : index
    %24 = vector.load %arg4[%c0_16, %c0_17] : memref<48x216xbf16, #tpu.memory_space<vmem>>, vector<48x216xbf16>
    %25 = arith.truncf %17 : vector<216x128xf32> to vector<216x128xbf16>
    %cst_18 = arith.constant dense<0.000000e+00> : vector<48x128xf32>
    %26 = tpu.matmul %24, %25, %cst_18 {dimension_numbers = #tpu.dot_dimension_numbers<[1], [0], [0], [1], [0, 0, 1, 1], [], []>} : vector<48x216xbf16>, vector<216x128xbf16>, vector<48x128xf32> -> vector<48x128xf32>
    %27 = vector.broadcast %19 : vector<48x1xf32> to vector<48x128xf32>
    %28 = arith.addf %26, %27 : vector<48x128xf32>
    %cst_19 = arith.constant 0.000000e+00 : f32
    %29 = vector.broadcast %cst_19 : f32 to vector<48x128xf32>
    %30 = arith.maximumf %28, %29 : vector<48x128xf32>
    %c0_20 = arith.constant 0 : index
    %c0_21 = arith.constant 0 : index
    %31 = vector.load %arg2[%c0_20, %c0_21] : memref<1x128xf32, #tpu.memory_space<vmem>>, vector<1x128xf32>
    %c0_22 = arith.constant 0 : index
    %c0_23 = arith.constant 0 : index
    %32 = vector.load %arg6[%c0_22, %c0_23] : memref<16x48xf32, #tpu.memory_space<vmem>>, vector<16x48xf32>
    %cst_24 = arith.constant dense<0.000000e+00> : vector<16x128xf32>
    %33 = tpu.matmul %32, %30, %cst_24 {dimension_numbers = #tpu.dot_dimension_numbers<[1], [0], [0], [1], [0, 0, 1, 1], [], []>} : vector<16x48xf32>, vector<48x128xf32>, vector<16x128xf32> -> vector<16x128xf32>
    %34 = vector.broadcast %20 : vector<16x1xf32> to vector<16x128xf32>
    %35 = vector.broadcast %31 : vector<1x128xf32> to vector<16x128xf32>
    %36 = arith.mulf %34, %35 : vector<16x128xf32>
    %37 = arith.addf %33, %36 : vector<16x128xf32>
    %38 = vector.broadcast %21 : vector<16x1xf32> to vector<16x128xf32>
    %39 = arith.addf %37, %38 : vector<16x128xf32>
    %cst_25 = arith.constant 0.000000e+00 : f32
    %40 = vector.broadcast %cst_25 : f32 to vector<16x128xf32>
    %41 = arith.maximumf %39, %40 : vector<16x128xf32>
    %42 = vector.broadcast %22 : vector<16x1xf32> to vector<16x128xf32>
    %43 = arith.mulf %41, %42 : vector<16x128xf32>
    %cst_26 = arith.constant dense<0.000000e+00> : vector<128xf32>
    %44 = vector.multi_reduction <add>, %43, %cst_26 [0] : vector<16x128xf32> to vector<128xf32>
    %45 = vector.shape_cast %44 : vector<128xf32> to vector<1x128xf32>
    %46 = vector.broadcast %23 : vector<1x1xf32> to vector<1x128xf32>
    %47 = arith.addf %45, %46 : vector<1x128xf32>
    %c0_27 = arith.constant 0 : index
    %c0_28 = arith.constant 0 : index
    %48 = vector.load %arg7[%c0_27, %c0_28] : memref<1x128xf32, #tpu.memory_space<vmem>>, vector<1x128xf32>
    tpu.vector_store %arg7[%c0_27, %c0_28], %47 {strides = array<i32>} : memref<1x128xf32, #tpu.memory_space<vmem>>, vector<1x128xf32>,
    return
  }
  func.func @transform_0(%arg0: i32) -> (i32, i32) {
    %c0_i32 = arith.constant 0 : i32
    %c0_i32_0 = arith.constant 0 : i32
    return %c0_i32, %arg0 : i32, i32
  }
  func.func @transform_1(%arg0: i32) -> (i32, i32) {
    %c0_i32 = arith.constant 0 : i32
    %c0_i32_0 = arith.constant 0 : i32
    return %c0_i32, %arg0 : i32, i32
  }
  func.func @transform_2(%arg0: i32) -> (i32, i32, i32) {
    %c0_i32 = arith.constant 0 : i32
    %c0_i32_0 = arith.constant 0 : i32
    %c0_i32_1 = arith.constant 0 : i32
    %c0_i32_2 = arith.constant 0 : i32
    return %c0_i32, %c0_i32_0, %c0_i32_1 : i32, i32, i32
  }
  func.func @transform_3(%arg0: i32) -> (i32, i32) {
    %c0_i32 = arith.constant 0 : i32
    %c0_i32_0 = arith.constant 0 : i32
    %c0_i32_1 = arith.constant 0 : i32
    return %c0_i32, %c0_i32_0 : i32, i32
  }
  func.func @transform_4(%arg0: i32) -> (i32, i32) {
    %c0_i32 = arith.constant 0 : i32
    %c0_i32_0 = arith.constant 0 : i32
    %c0_i32_1 = arith.constant 0 : i32
    return %c0_i32, %c0_i32_0 : i32, i32
  }
  func.func @transform_5(%arg0: i32) -> (i32, i32) {
    %c0_i32 = arith.constant 0 : i32
    %c0_i32_0 = arith.constant 0 : i32
    %c0_i32_1 = arith.constant 0 : i32
    return %c0_i32, %c0_i32_0 : i32, i32
  }
  func.func @transform_6(%arg0: i32) -> (i32, i32) {
    %c0_i32 = arith.constant 0 : i32
    %c0_i32_0 = arith.constant 0 : i32
    return %c0_i32, %arg0 : i32, i32
  }
}

</mosaic_0001>

<bundles_post_ra>
// kernel: tpu_custom_call.1
= control target key start
LH: loop header
LB: loop body
LE: loop exit
PB: predicated region body
PF: predicated region fallthrough
CT: control target
= control target key end

     0   :  { %11 = vsyncpa [#allocation3], 0  ;;  %s2585_s0 = inlined_call_operand.hbm [shape: bf16[128,128], index: 0, kind: input, shape index: {}]   ;;  %s2586_s1 = inlined_call_operand.vmem [shape: f32[1,128], index: 1, kind: input, shape index: {}]   ;;  %s2587_s2 = inlined_call_operand.hbm [shape: bf16[4,216,128], index: 2, kind: input, shape index: {}]   ;;  %s2588_s3 = inlined_call_operand.vmem [shape: bf16[48,216], index: 3, kind: input, shape index: {}]   ;;  %s2589_s4 = inlined_call_operand.vmem [shape: f32[48,8], index: 4, kind: input, shape index: {}]   ;;  %s2590_s5 = inlined_call_operand.vmem [shape: f32[16,48], index: 5, kind: input, shape index: {}]   ;;  %s2591_s6 = inlined_call_operand.hbm [shape: f32[1,128], index: 6, kind: output, shape index: {}]  }
   0x1   :  { %12 = vsyncpa [#allocation6], 0 }
   0x2   :  { %13 = vsyncpa [#allocation4], 0  ;;  %s2118_s21 = smov [#allocation2]   ;;  %s2046_s25 = scalar_lea.hbm %s2585_s0, 1024 }
   0x3   :  { %s19_s22 = sshll.u32 %s2118_s21, 4  ;;  %p2047_p0 = scmp.ne.s32.totalorder %s2585_s0, %s2046_s25  ;;  %s20_s22 = int_to_ptr.vmem [resolvable:$true] %s19_s22 }
   0x4   :  { %p2050_p1 = scmp.lt.u32.totalorder %s2046_s25, %s2585_s0 }
   0x6   :  { %p2052_p2 = pnand %p2050_p1, %p2047_p0 }
   0x8   :  { %2055 = shalt.err (!%p2052_p2)
}
   0x9   :  { %s2056_s30 = scalar_lea.vmem %s20_s22, 1024  ;;  %p2061_p4 = scmp.lt.s32.totalorder %s20_s22, %s20_s22 }
   0xa   :  { %p2057_p3 = scmp.ne.s32.totalorder %s20_s22, %s2056_s30  ;;  %p2062_p5 = scmp.lt.s32.totalorder %s2056_s30, %s2056_s30 }
   0xc   :  { %p2063_p6 = por %p2062_p5, %p2061_p4 }
   0xe   :  { %p2064_p7 = pnand %p2063_p6, %p2057_p3 }
  0x10   :  { %2067 = shalt.err (!%p2064_p7)
}
  0x11   :  { %s2119_s7 = smov 64   ;;  %s2120_s8 = smov 4  }
  0x12   :  { %25 = dma.hbm_to_vmem [thread:$0]  %s2585_s0, 1024, %s20_s22, [#allocation3], %s2119_s7, %s2119_s7, %s2120_s8  }
  0x13   :  { %s2121_s11 = smov [#allocation5]   ;;  %s2068_s15 = scalar_lea.hbm %s2587_s2, 6912 }
  0x14   :  { %s33_s12 = sshll.u32 %s2121_s11, 4  ;;  %p2069_p8 = scmp.ne.s32.totalorder %s2587_s2, %s2068_s15  ;;  %s34_s12 = int_to_ptr.vmem [resolvable:$true] %s33_s12 }
  0x15   :  { %p2072_p9 = scmp.lt.u32.totalorder %s2068_s15, %s2587_s2 }
  0x17   :  { %p2074_p10 = pnand %p2072_p9, %p2069_p8 }
  0x19   :  { %2077 = shalt.err (!%p2074_p10)
}
  0x1a   :  { %s2078_s20 = scalar_lea.vmem %s34_s12, 6912  ;;  %p2083_p12 = scmp.lt.s32.totalorder %s34_s12, %s34_s12 }
  0x1b   :  { %p2079_p11 = scmp.ne.s32.totalorder %s34_s12, %s2078_s20  ;;  %p2084_p13 = scmp.lt.s32.totalorder %s2078_s20, %s2078_s20 }
  0x1d   :  { %p2085_p0 = por %p2084_p13, %p2083_p12 }
  0x1f   :  { %p2086_p1 = pnand %p2085_p0, %p2079_p11 }
  0x21   :  { %2089 = shalt.err (!%p2086_p1)
}
  0x22   :  { %39 = dma.hbm_to_vmem [thread:$0]  %s2587_s2, 6912, %s34_s12, [#allocation6], %s2119_s7, %s2119_s7, %s2120_s8  }
  0x23   :  { %2112 = dma.done.wait [#allocation3], 1024  }
  0x24   :  { %2113 = vsyncadd [#allocation3], 4294966272 }
  0x25   :  { %2114 = dma.done.wait [#allocation6], 6912  }
  0x26   :  { %2115 = vsyncadd [#allocation6], 4294960384  ;;  %v1973_v0 = vld [vmem:[#allocation2] sm:$0xff]   ;;  %v1974_v1 = vld [vmem:[#allocation2 + $0x8] sm:$0xff]   ;;  %vm1323_vm0 = vcmask 719872   ;;  %vm1333_vm1 = vcmask 1043456  }
  0x27   :  { %1724 = vmatprep.subr.bf16.mxu0 %v1973_v0  ;;  %1768 = vmatprep.subr.bf16.mxu1 %v1973_v0  ;;  %v1975_v2 = vld [vmem:[#allocation2 + $0x10] sm:$0xff]   ;;  %v2187_v3 = vld [vmem:[#allocation2 + $0x18] sm:$0xff]   ;;  %v1981_v4 = vld [vmem:[#allocation5] sm:$0xff]   ;;  %vm1419_vm2 = vcmask 392192  }
  0x28   :  { %1725 = vmatpush3.bf16.msra.mxu0 %v1973_v0  ;;  %1769 = vmatpush3.bf16.msra.mxu1 %v1973_v0  ;;  %v1982_v5 = vld [vmem:[#allocation5 + $0x6c] sm:$0xff]   ;;  %v2191_v6 = vld [vmem:[#allocation2 + $0x20] sm:$0xff]   ;;  %v2209_v9 = vld [vmem:[#allocation2 + $0x38] sm:$0xff]  }
  0x29   :  { %1726 = vmatprep.subr.bf16.mxu0 %v1974_v1  ;;  %1770 = vmatprep.subr.bf16.mxu1 %v1974_v1  ;;  %v2197_v7 = vld [vmem:[#allocation2 + $0x28] sm:$0xff]   ;;  %v2203_v8 = vld [vmem:[#allocation2 + $0x30] sm:$0xff]   ;;  %v1986_v13 = vld [vmem:[#allocation5 + $0x7c] sm:$0xff]  }
  0x2a   :  { %1740 = vmatprep.mubr.bf16.mxu0 %v1981_v4  ;;  %1784 = vmatprep.mubr.bf16.mxu1 %v1982_v5  ;;  %v1983_v10 = vld [vmem:[#allocation5 + $0x8] sm:$0xff]   ;;  %v1984_v11 = vld [vmem:[#allocation5 + $0x74] sm:$0xff]   ;;  %v1989_v16 = vld [vmem:[#allocation5 + $0x20] sm:$0xff]  }
  0x2b   :  { %v1985_v12 = vld [vmem:[#allocation5 + $0x10] sm:$0xff]   ;;  %v1987_v14 = vld [vmem:[#allocation5 + $0x18] sm:$0xff]   ;;  %v1988_v15 = vld [vmem:[#allocation5 + $0x84] sm:$0xff]  }
  0x2c   :  { %1727 = vmatpush3.bf16.msra.mxu0 %v1974_v1  ;;  %1771 = vmatpush3.bf16.msra.mxu1 %v1974_v1  ;;  %v1990_v17 = vld [vmem:[#allocation5 + $0x8c] sm:$0xff]   ;;  %v1992_v19 = vld [vmem:[#allocation5 + $0x94] sm:$0xff]   ;;  %v1994_v21 = vld [vmem:[#allocation5 + $0x9c] sm:$0xff]  }
  0x2d   :  { %1728 = vmatprep.subr.bf16.mxu0 %v1975_v2  ;;  %1772 = vmatprep.subr.bf16.mxu1 %v1975_v2  ;;  %v1991_v18 = vld [vmem:[#allocation5 + $0x28] sm:$0xff]   ;;  %v1993_v20 = vld [vmem:[#allocation5 + $0x30] sm:$0xff]   ;;  %v1995_v22 = vld [vmem:[#allocation5 + $0x38] sm:$0xff]  }
  0x2e   :  { %v1996_v23 = vld [vmem:[#allocation5 + $0xa4] sm:$0xff]   ;;  %v1998_v25 = vld [vmem:[#allocation5 + $0xac] sm:$0xff]   ;;  %v2000_v27 = vld [vmem:[#allocation5 + $0xb4] sm:$0xff]  }
  0x2f   :  { %v1997_v24 = vld [vmem:[#allocation5 + $0x40] sm:$0xff]   ;;  %v1999_v26 = vld [vmem:[#allocation5 + $0x48] sm:$0xff]   ;;  %v2001_v28 = vld [vmem:[#allocation5 + $0x50] sm:$0xff]  }
  0x30   :  { %1729 = vmatpush3.bf16.msra.mxu0 %v1975_v2  ;;  %1773 = vmatpush3.bf16.msra.mxu1 %v1975_v2  ;;  %v2002_v29 = vld [vmem:[#allocation5 + $0xbc] sm:$0xff]   ;;  %v2004_v31 = vld [vmem:[#allocation5 + $0xc4] sm:$0xff]   ;;  %v2006_v33 = vld [vmem:[#allocation5 + $0xcc] sm:$0xff]  }
  0x31   :  { %1730 = vmatprep.subr.bf16.mxu0 %v2187_v3  ;;  %1774 = vmatprep.subr.bf16.mxu1 %v2187_v3  ;;  %v2003_v30 = vld [vmem:[#allocation5 + $0x58] sm:$0xff]   ;;  %v2005_v32 = vld [vmem:[#allocation5 + $0x60] sm:$0xff]   ;;  %v2007_v34 = vld [vmem:[#allocation5 + $0x68] ss:$0 sps:$4 sm:$0xff]  }
  0x32   :  { %v2008_v35 = vld [vmem:[#allocation5 + $0xd4] ss:$0 sps:$4 sm:$0xff]   ;;  %v2009_v36 = vld [vmem:[#allocation5 + $0xd8] sm:$0xff]   ;;  %v2010_v37 = vld [vmem:[#allocation5 + $0x144] sm:$0xff]  }
  0x33   :  { %v2011_v38 = vld [vmem:[#allocation5 + $0xe0] sm:$0xff]   ;;  %v2012_v39 = vld [vmem:[#allocation5 + $0x14c] sm:$0xff]   ;;  %v2014_v41 = vld [vmem:[#allocation5 + $0x154] sm:$0xff]  }
  0x34   :  { %1731 = vmatpush3.bf16.msra.mxu0 %v2187_v3  ;;  %1775 = vmatpush3.bf16.msra.mxu1 %v2187_v3  ;;  %v2013_v40 = vld [vmem:[#allocation5 + $0xe8] sm:$0xff]   ;;  %v2015_v42 = vld [vmem:[#allocation5 + $0xf0] sm:$0xff]   ;;  %v2016_v43 = vld [vmem:[#allocation5 + $0x15c] sm:$0xff]  }
  0x35   :  { %1732 = vmatprep.subr.bf16.mxu0 %v2191_v6  ;;  %1776 = vmatprep.subr.bf16.mxu1 %v2191_v6  ;;  %v2017_v44 = vld [vmem:[#allocation5 + $0xf8] sm:$0xff]   ;;  %v2018_v45 = vld [vmem:[#allocation5 + $0x164] sm:$0xff]   ;;  %v2020_v47 = vld [vmem:[#allocation5 + $0x16c] sm:$0xff]  }
  0x36   :  { %v2019_v46 = vld [vmem:[#allocation5 + $0x100] sm:$0xff]   ;;  %v2021_v48 = vld [vmem:[#allocation5 + $0x108] sm:$0xff]   ;;  %v2022_v49 = vld [vmem:[#allocation5 + $0x174] sm:$0xff]  }
  0x37   :  { %v2023_v50 = vld [vmem:[#allocation5 + $0x110] sm:$0xff]   ;;  %v2024_v51 = vld [vmem:[#allocation5 + $0x17c] sm:$0xff]   ;;  %v2026_v53 = vld [vmem:[#allocation5 + $0x184] sm:$0xff]  }
  0x38   :  { %1733 = vmatpush3.bf16.msra.mxu0 %v2191_v6  ;;  %1777 = vmatpush3.bf16.msra.mxu1 %v2191_v6  ;;  %v2025_v52 = vld [vmem:[#allocation5 + $0x118] sm:$0xff]   ;;  %v2027_v54 = vld [vmem:[#allocation5 + $0x120] sm:$0xff]   ;;  %v2028_v55 = vld [vmem:[#allocation5 + $0x18c] sm:$0xff]  }
  0x39   :  { %1734 = vmatprep.subr.bf16.mxu0 %v2197_v7  ;;  %1778 = vmatprep.subr.bf16.mxu1 %v2197_v7  ;;  %v2029_v56 = vld [vmem:[#allocation5 + $0x128] sm:$0xff]   ;;  %v2030_v57 = vld [vmem:[#allocation5 + $0x194] sm:$0xff]   ;;  %v2032_v59 = vld [vmem:[#allocation5 + $0x19c] sm:$0xff]  }
  0x3a   :  { %v2031_v58 = vld [vmem:[#allocation5 + $0x130] sm:$0xff]   ;;  %v2033_v60 = vld [vmem:[#allocation5 + $0x138] sm:$0xff]   ;;  %v2034_v61 = vld [vmem:[#allocation5 + $0x1a4] sm:$0xff]  }
  0x3b   :  { %v2035_v62 = vld [vmem:[#allocation5 + $0x140] ss:$0 sps:$4 sm:$0xff]   ;;  %v2036_v63 = vld [vmem:[#allocation5 + $0x1ac] ss:$0 sps:$4 sm:$0xff]  }
  0x3c   :  { %1735 = vmatpush3.bf16.msra.mxu0 %v2197_v7  ;;  %1779 = vmatpush3.bf16.msra.mxu1 %v2197_v7 }
  0x3d   :  { %1736 = vmatprep.subr.bf16.mxu0 %v2203_v8  ;;  %1780 = vmatprep.subr.bf16.mxu1 %v2203_v8 }
  0x40   :  { %1737 = vmatpush3.bf16.msra.mxu0 %v2203_v8  ;;  %1781 = vmatpush3.bf16.msra.mxu1 %v2203_v8 }
  0x41   :  { %1738 = vmatprep.subr.bf16.mxu0 %v2209_v9  ;;  %1782 = vmatprep.subr.bf16.mxu1 %v2209_v9 }
  0x44   :  { %1739 = vmatpush3.bf16.msra.mxu0 %v2209_v9  ;;  %1783 = vmatpush3.bf16.msra.mxu1 %v2209_v9 }
  0x45   :  { %1812 = vmatprep.subr.bf16.mxu0 %v1973_v0  ;;  %1856 = vmatprep.subr.bf16.mxu1 %v1973_v0 }
  0x47   :  { %1741 = vmatmul.mubr.bf16.vlgmr.msra.gmra.mrb[0].mxu0 %v1983_v10  ;;  %1785 = vmatmul.mubr.bf16.vlgmr.msra.gmra.mrb[0].mxu1 %v1984_v11 }
  0x48   :  { %1813 = vmatpush3.bf16.msra.mxu0 %v1973_v0  ;;  %1857 = vmatpush3.bf16.msra.mxu1 %v1973_v0  ;;  %v2592_v0 = vmov 0  }
  0x49   :  { %1744 = vmatprep.mubr.bf16.mxu0 %v1985_v12  ;;  %1788 = vmatprep.mubr.bf16.mxu1 %v1986_v13 }
  0x4a   :  { %1814 = vmatprep.subr.bf16.mxu0 %v1974_v1  ;;  %1858 = vmatprep.subr.bf16.mxu1 %v1974_v1 }
  0x4b   :  { %1965 = vset.pattern.permute.xlu0 %v2592_v0  ;;  %1966 = vset.pattern.permute.xlu1 %v2592_v0 }
  0x4c   :  { %1815 = vmatpush3.bf16.msra.mxu0 %v1974_v1  ;;  %1859 = vmatpush3.bf16.msra.mxu1 %v1974_v1  ;;  %v2039_v1 = vld [vmem:[%s2588_s3 + $0x4] ss:$8 sps:$4 sm:$0xff]  }
  0x4d   :  { %1816 = vmatprep.subr.bf16.mxu0 %v1975_v2  ;;  %1860 = vmatprep.subr.bf16.mxu1 %v1975_v2 }
  0x4f   :  { %1745 = vmatmul.mubr.bf16.gmra.mrb[4].mxu0 %v1987_v14  ;;  %1789 = vmatmul.mubr.bf16.gmra.mrb[4].mxu1 %v1988_v15  ;;  %v2274_v14 = vld [vmem:[%s2589_s4] sm:$0xff]  ;;  %v1242_v15 = vld [vmem:[%s2589_s4 + $0x10] sm:$0xff] }
  0x50   :  { %1748 = vmatprep.mubr.bf16.mxu0 %v1989_v16  ;;  %1792 = vmatprep.mubr.bf16.mxu1 %v1990_v17  ;;  %2607 = vst [vmem:[#allocation11_spill] sm:$0xff] %v2274_v14  ;;  %v2285_v17 = vld [vmem:[%s2589_s4 + $0x8] sm:$0xff] }
  0x51   :  { %1817 = vmatpush3.bf16.msra.mxu0 %v1975_v2  ;;  %1861 = vmatpush3.bf16.msra.mxu1 %v1975_v2  ;;  %v2042_v2 = vld [vmem:[%s2588_s3 + $0x14] ss:$8 sps:$4 sm:$0xff]   ;;  %2608 = vst [vmem:[#allocation12_spill] sm:$0xff] %v2285_v17 }
  0x52   :  { %1818 = vmatprep.subr.bf16.mxu0 %v2187_v3  ;;  %1862 = vmatprep.subr.bf16.mxu1 %v2187_v3 }
  0x53   :  { %1268 = vperm.xlu0 %1965, %v2274_v14   ;;  %1278 = vperm.xlu1 %1966, %v1242_v15  }
  0x55   :  { %1819 = vmatpush3.bf16.msra.mxu0 %v2187_v3  ;;  %1863 = vmatpush3.bf16.msra.mxu1 %v2187_v3 }
  0x56   :  { %1820 = vmatprep.subr.bf16.mxu0 %v2191_v6  ;;  %1864 = vmatprep.subr.bf16.mxu1 %v2191_v6 }
  0x57   :  { %1749 = vmatmul.mubr.bf16.gmra.mrb[8].mxu0 %v1991_v18  ;;  %1793 = vmatmul.mubr.bf16.gmra.mrb[8].mxu1 %v1992_v19  ;;  %v1243_v18 = vld [vmem:[%s2589_s4 + $0x18] sm:$0xff] }
  0x58   :  { %1752 = vmatprep.mubr.bf16.mxu0 %v1993_v20  ;;  %1796 = vmatprep.mubr.bf16.mxu1 %v1994_v21 }
  0x59   :  { %1821 = vmatpush3.bf16.msra.mxu0 %v2191_v6  ;;  %1865 = vmatpush3.bf16.msra.mxu1 %v2191_v6 }
  0x5a   :  { %1822 = vmatprep.subr.bf16.mxu0 %v2197_v7  ;;  %1866 = vmatprep.subr.bf16.mxu1 %v2197_v7 }
  0x5b   :  { %1273 = vperm.xlu0 %1965, %v2285_v17   ;;  %1283 = vperm.xlu1 %1966, %v1243_v18  }
  0x5d   :  { %1823 = vmatpush3.bf16.msra.mxu0 %v2197_v7  ;;  %1867 = vmatpush3.bf16.msra.mxu1 %v2197_v7 }
  0x5e   :  { %1824 = vmatprep.subr.bf16.mxu0 %v2203_v8  ;;  %1868 = vmatprep.subr.bf16.mxu1 %v2203_v8 }
  0x5f   :  { %1753 = vmatmul.mubr.bf16.gmra.mrb[12].mxu0 %v1995_v22  ;;  %1797 = vmatmul.mubr.bf16.gmra.mrb[12].mxu1 %v1996_v23 }
  0x60   :  { %1756 = vmatprep.mubr.bf16.mxu0 %v1997_v24  ;;  %1800 = vmatprep.mubr.bf16.mxu1 %v1998_v25  ;;  %v1244_v24 = vld [vmem:[%s2589_s4 + $0x20] sm:$0xff]  ;;  %v1245_v25 = vld [vmem:[%s2589_s4 + $0x28] sm:$0xff] }
  0x61   :  { %1825 = vmatpush3.bf16.msra.mxu0 %v2203_v8  ;;  %1869 = vmatpush3.bf16.msra.mxu1 %v2203_v8 }
  0x62   :  { %1826 = vmatprep.subr.bf16.mxu0 %v2209_v9  ;;  %1870 = vmatprep.subr.bf16.mxu1 %v2209_v9 }
  0x63   :  { %1288 = vperm.xlu0 %1965, %v1244_v24   ;;  %1293 = vperm.xlu1 %1966, %v1245_v25  }
  0x65   :  { %1827 = vmatpush3.bf16.msra.mxu0 %v2209_v9  ;;  %1871 = vmatpush3.bf16.msra.mxu1 %v2209_v9 }
  0x66   :  { %1337 = vmatprep.subr.bf16.mxu0 %v2592_v0  ;;  %1927 = vmatprep.subr.bf16.mxu1 %v2592_v0 }
  0x67   :  { %1757 = vmatmul.mubr.bf16.gmra.mrb[16].mxu0 %v1999_v26  ;;  %1801 = vmatmul.mubr.bf16.gmra.mrb[16].mxu1 %v2000_v27 }
  0x68   :  { %1760 = vmatprep.mubr.bf16.mxu0 %v2001_v28  ;;  %1804 = vmatprep.mubr.bf16.mxu1 %v2002_v29 }
  0x6f   :  { %1761 = vmatmul.mubr.bf16.gmra.mrb[20].mxu0 %v2003_v30  ;;  %1805 = vmatmul.mubr.bf16.gmra.mrb[20].mxu1 %v2004_v31 }
  0x70   :  { %1764 = vmatprep.mubr.bf16.mxu0 %v2005_v32  ;;  %1808 = vmatprep.mubr.bf16.mxu1 %v2006_v33 }
  0x77   :  { %1765 = vmatmul.mubr.bf16.gmra.mrb[24].mxu0 %v2007_v34  ;;  %1809 = vmatmul.mubr.bf16.gmra.mrb[24].mxu1 %v2008_v35 }
  0x78   :  { %1828 = vmatprep.mubr.bf16.mxu0 %v2009_v36  ;;  %1872 = vmatprep.mubr.bf16.mxu1 %v2010_v37 }
  0x7f   :  { %1829 = vmatmul.mubr.bf16.vlgmr.msra.gmra.mrb[28].mxu0 %v2011_v38  ;;  %1873 = vmatmul.mubr.bf16.vlgmr.msra.gmra.mrb[28].mxu1 %v2012_v39 }
  0x80   :  { %1832 = vmatprep.mubr.bf16.mxu0 %v2013_v40  ;;  %1876 = vmatprep.mubr.bf16.mxu1 %v2014_v41 }
  0x87   :  { %1833 = vmatmul.mubr.bf16.gmra.mrb[32].mxu0 %v2015_v42  ;;  %1877 = vmatmul.mubr.bf16.gmra.mrb[32].mxu1 %v2016_v43 }
  0x88   :  { %1836 = vmatprep.mubr.bf16.mxu0 %v2017_v44  ;;  %1880 = vmatprep.mubr.bf16.mxu1 %v2018_v45 }
  0x8f   :  { %1837 = vmatmul.mubr.bf16.gmra.mrb[36].mxu0 %v2019_v46  ;;  %1881 = vmatmul.mubr.bf16.gmra.mrb[36].mxu1 %v2020_v47 }
  0x90   :  { %1840 = vmatprep.mubr.bf16.mxu0 %v2021_v48  ;;  %1884 = vmatprep.mubr.bf16.mxu1 %v2022_v49 }
  0x97   :  { %1841 = vmatmul.mubr.bf16.gmra.mrb[40].mxu0 %v2023_v50  ;;  %1885 = vmatmul.mubr.bf16.gmra.mrb[40].mxu1 %v2024_v51 }
  0x98   :  { %1844 = vmatprep.mubr.bf16.mxu0 %v2025_v52  ;;  %1888 = vmatprep.mubr.bf16.mxu1 %v2026_v53 }
  0x9f   :  { %1845 = vmatmul.mubr.bf16.gmra.mrb[44].mxu0 %v2027_v54  ;;  %1889 = vmatmul.mubr.bf16.gmra.mrb[44].mxu1 %v2028_v55 }
  0xa0   :  { %1848 = vmatprep.mubr.bf16.mxu0 %v2029_v56  ;;  %1892 = vmatprep.mubr.bf16.mxu1 %v2030_v57 }
  0xa7   :  { %1849 = vmatmul.mubr.bf16.gmra.mrb[48].mxu0 %v2031_v58  ;;  %1893 = vmatmul.mubr.bf16.gmra.mrb[48].mxu1 %v2032_v59 }
  0xa8   :  { %1852 = vmatprep.mubr.bf16.mxu0 %v2033_v60  ;;  %1896 = vmatprep.mubr.bf16.mxu1 %v2034_v61 }
  0xaf   :  { %1853 = vmatmul.mubr.bf16.gmra.mrb[52].mxu0 %v2035_v62  ;;  %1897 = vmatmul.mubr.bf16.gmra.mrb[52].mxu1 %v2036_v63 }
  0xb0   :  { %1622 = vmatprep.mubr.msk.bf16.mxu0 %vm1323_vm0, %v2039_v1  ;;  %1623 = vmatprep.mubr.msk.bf16.mxu1 %vm1323_vm0, %v2042_v2 }
 0x11a   :  { %v2249_v3 = vpop.f32.mrb[0].mxu0  ;;  %v2251_v4 = vpop.f32.mrb[0].mxu1 }
 0x11b   :  { %v2255_v6 = vpop.f32.mrb[1].mxu0  ;;  %v2257_v7 = vpop.f32.mrb[1].mxu1  ;;  %v2618_v24 = vmax.f32 %v2249_v3, %v2251_v4 }
 0x11c   :  { %v2261_v9 = vpop.f32.mrb[2].mxu0  ;;  %v2263_v10 = vpop.f32.mrb[2].mxu1 }
 0x11d   :  { %v2267_v12 = vpop.f32.mrb[3].mxu0  ;;  %v2269_v13 = vpop.f32.mrb[3].mxu1 }
 0x122   :  { %v2290_v19 = vpop.f32.mrb[4].mxu0  ;;  %v2292_v20 = vpop.f32.mrb[4].mxu1 }
 0x123   :  { %v2297_v22 = vpop.f32.mrb[5].mxu0  ;;  %v2299_v23 = vpop.f32.mrb[5].mxu1 }
 0x124   :  { %v2309_v27 = vpop.f32.mrb[6].mxu0  ;;  %v2311_v28 = vpop.f32.mrb[6].mxu1 }
 0x125   :  { %v2315_v30 = vpop.f32.mrb[7].mxu0  ;;  %v2317_v31 = vpop.f32.mrb[7].mxu1 }
 0x12a   :  { %v2321_v33 = vpop.f32.mrb[8].mxu0  ;;  %v2323_v34 = vpop.f32.mrb[8].mxu1 }
 0x12b   :  { %v2327_v36 = vpop.f32.mrb[9].mxu0  ;;  %v2329_v37 = vpop.f32.mrb[9].mxu1 }
 0x12c   :  { %v2333_v39 = vpop.f32.mrb[10].mxu0  ;;  %v2335_v40 = vpop.f32.mrb[10].mxu1 }
 0x12d   :  { %v2339_v42 = vpop.f32.mrb[11].mxu0  ;;  %v2341_v43 = vpop.f32.mrb[11].mxu1 }
 0x132   :  { %v2345_v45 = vpop.f32.mrb[12].mxu0  ;;  %v2347_v46 = vpop.f32.mrb[12].mxu1 }
 0x133   :  { %v2351_v48 = vpop.f32.mrb[13].mxu0  ;;  %v2353_v49 = vpop.f32.mrb[13].mxu1 }
 0x134   :  { %v2357_v51 = vpop.f32.mrb[14].mxu0  ;;  %v2359_v52 = vpop.f32.mrb[14].mxu1 }
 0x135   :  { %v2363_v54 = vpop.f32.mrb[15].mxu0  ;;  %v2365_v55 = vpop.f32.mrb[15].mxu1 }
 0x13a   :  { %v2369_v57 = vpop.f32.mrb[16].mxu0  ;;  %v2371_v58 = vpop.f32.mrb[16].mxu1 }
 0x13b   :  { %v2375_v60 = vpop.f32.mrb[17].mxu0  ;;  %v2377_v61 = vpop.f32.mrb[17].mxu1 }
 0x13c   :  { %v2381_v63 = vpop.f32.mrb[18].mxu0  ;;  %v2383_v1 = vpop.f32.mrb[18].mxu1 }
 0x13d   :  { %v2387_v15 = vpop.f32.mrb[19].mxu0  ;;  %v2389_v18 = vpop.f32.mrb[19].mxu1 }
 0x142   :  { %v2393_v25 = vpop.f32.mrb[20].mxu0  ;;  %v2395_v59 = vpop.f32.mrb[20].mxu1 }
 0x143   :  { %v2399_v56 = vpop.f32.mrb[21].mxu0  ;;  %v2401_v53 = vpop.f32.mrb[21].mxu1 }
 0x144   :  { %v2405_v50 = vpop.f32.mrb[22].mxu0  ;;  %v2407_v47 = vpop.f32.mrb[22].mxu1 }
 0x145   :  { %2609 = vst [vmem:[#allocation13_spill] sm:$0xff] %v2407_v47  ;;  %v2411_v44 = vpop.f32.mrb[23].mxu0  ;;  %v2413_v41 = vpop.f32.mrb[23].mxu1 }
 0x146   :  { %2610 = vst [vmem:[#allocation14_spill] sm:$0xff] %v2411_v44  ;;  %2611 = vst [vmem:[#allocation15_spill] sm:$0xff] %v2413_v41  ;;  %v2619_v41 = vmax.f32 %v2255_v6, %v2257_v7 }
 0x14a   :  { %v2417_v38 = vpop.f32.mrb[24].mxu0  ;;  %v2419_v35 = vpop.f32.mrb[24].mxu1 }
 0x14b   :  { %2612 = vst [vmem:[#allocation16_spill] sm:$0xff] %v2417_v38  ;;  %2613 = vst [vmem:[#allocation17_spill] sm:$0xff] %v2419_v35  ;;  %v2423_v32 = vpop.f32.mrb[25].mxu0  ;;  %v2425_v0 = vpop.f32.mrb[25].mxu1 }
 0x14c   :  { %2614 = vst [vmem:[#allocation18_spill] sm:$0xff] %v2423_v32  ;;  %2615 = vst [vmem:[#allocation19_spill] sm:$0xff] %v2425_v0  ;;  %v1767_v29 = vpop.f32.mrb[26].mxu0  ;;  %v1811_v26 = vpop.f32.mrb[26].mxu1 }
 0x14d   :  { %v2429_v21 = vpop.f32.mrb[27].mxu0  ;;  %v2431_v16 = vpop.f32.mrb[27].mxu1 }
 0x14e   :  { %2616 = vst [vmem:[#allocation20_spill] sm:$0xff] %v2429_v21  ;;  %2617 = vst [vmem:[#allocation21_spill] sm:$0xff] %v2431_v16 }
 0x152   :  { %v1830_v11 = vpop.f32.mrb[28].mxu0  ;;  %v1874_v8 = vpop.f32.mrb[28].mxu1 }
 0x153   :  { %v1161_v5 = vmax.f32 %v1830_v11, %v1874_v8  ;;  %v795_v2 = vpop.f32.mrb[29].mxu0  ;;  %v1049_v14 = vpop.f32.mrb[29].mxu1  ;;  %v2620_v8 = vmax.f32 %v2261_v9, %v2263_v10  ;;  %v2622_v9 = vmax.f32 %v2290_v19, %v2292_v20  ;;  %v2626_v19 = vmax.f32 %v2315_v30, %v2317_v31 }
 0x154   :  { %v1159_v17 = vmax.f32 %v795_v2, %v1049_v14  ;;  %v1831_v35 = vpop.f32.mrb[30].mxu0  ;;  %v1875_v38 = vpop.f32.mrb[30].mxu1  ;;  %v2621_v14 = vmax.f32 %v2267_v12, %v2269_v13 }
 0x155   :  { %v1188_v29 = vmax.f32 %v2618_v24, %v1161_v5  ;;  %v1162_v26 = vmax.f32 %v1831_v35, %v1875_v38  ;;  %v798_v0 = vpop.f32.mrb[31].mxu0  ;;  %v1052_v32 = vpop.f32.mrb[31].mxu1 }
 0x156   :  { %v1186_v44 = vmax.f32 %v2619_v41, %v1159_v17  ;;  %v1160_v62 = vmax.f32 %v798_v0, %v1052_v32 }
 0x157   :  { %v1189_v11 = vmax.f32 %v2620_v8, %v1162_v26  ;;  %v1215_v16 = vmax.f32 %v1188_v29, 0.0 }
 0x158   :  { %v1187_v2 = vmax.f32 %v2621_v14, %v1160_v62  ;;  %v1213_v3 = vmax.f32 %v1186_v44, 0.0  ;;  %v2623_v44 = vmax.f32 %v2297_v22, %v2299_v23 }
 0x159   :  { %v1216_v21 = vmax.f32 %v1189_v11, 0.0 }
 0x15a   :  { %v1214_v4 = vmax.f32 %v1187_v2, 0.0  ;;  %v1834_v5 = vpop.f32.mrb[32].mxu0  ;;  %v1878_v35 = vpop.f32.mrb[32].mxu1 }
 0x15b   :  { %v1253_v38 = vpack.c.bf16 %v1216_v21, %v1215_v16  ;;  %v1165_v24 = vmax.f32 %v1834_v5, %v1878_v35  ;;  %v811_v47 = vpop.f32.mrb[33].mxu0  ;;  %v1065_v6 = vpop.f32.mrb[33].mxu1  ;;  %v2624_v16 = vmax.f32 %v2309_v27, %v2311_v28  ;;  %v2627_v35 = vmax.f32 %v2321_v33, %v2323_v34 }
 0x15c   :  { %v1252_v7 = vpack.c.bf16 %v1214_v4, %v1213_v3  ;;  %v1163_v0 = vmax.f32 %v811_v47, %v1065_v6  ;;  %v1835_v17 = vpop.f32.mrb[34].mxu0  ;;  %v1879_v32 = vpop.f32.mrb[34].mxu1  ;;  %v2625_v47 = vmov 0   ;;  %v2630_v33 = vmax.f32 %v2339_v42, %v2341_v43 }
 0x15d   :  { %v1192_v10 = vmax.f32 %v2622_v9, %v1165_v24  ;;  %v1166_v12 = vmax.f32 %v1835_v17, %v1879_v32  ;;  %v814_v13 = vpop.f32.mrb[35].mxu0  ;;  %v1068_v41 = vpop.f32.mrb[35].mxu1  ;;  %v2629_v9 = vmax.f32 %v2333_v39, %v2335_v40 }
 0x15e   :  { %v1190_v62 = vmax.f32 %v2623_v44, %v1163_v0  ;;  %v1164_v29 = vmax.f32 %v814_v13, %v1068_v41  ;;  %1338 = vmatpush1.bf16.msra.mxu0 %v1252_v7  ;;  %1941 = vmatpush1.bf16.msra.mxu1 %v1252_v7 }
 0x15f   :  { %v1193_v21 = vmax.f32 %v2624_v16, %v1166_v12  ;;  %1339 = vmatprep.subr.bf16.mxu0 %v2625_v47  ;;  %1928 = vmatprep.subr.bf16.mxu1 %v2625_v47  ;;  %v1219_v26 = vmax.f32 %v1192_v10, 0.0 }
 0x160   :  { %v1191_v20 = vmax.f32 %v2626_v19, %v1164_v29  ;;  %v1217_v11 = vmax.f32 %v1190_v62, 0.0  ;;  %v2631_v19 = vmax.f32 %v2345_v45, %v2347_v46  ;;  %v2634_v45 = vmax.f32 %v2363_v54, %v2365_v55 }
 0x161   :  { %v1220_v8 = vmax.f32 %v1193_v21, 0.0 }
 0x162   :  { %v1218_v22 = vmax.f32 %v1191_v20, 0.0  ;;  %v1838_v23 = vpop.f32.mrb[36].mxu0  ;;  %v1882_v14 = vpop.f32.mrb[36].mxu1  ;;  %1340 = vmatpush1.bf16.msra.mxu0 %v1253_v38  ;;  %1942 = vmatpush1.bf16.msra.mxu1 %v1253_v38  ;;  %v2628_v38 = vmax.f32 %v2327_v36, %v2329_v37 }
 0x163   :  { %v1255_v2 = vpack.c.bf16 %v1220_v8, %v1219_v26  ;;  %v1169_v3 = vmax.f32 %v1838_v23, %v1882_v14  ;;  %v827_v27 = vpop.f32.mrb[37].mxu0  ;;  %v1081_v28 = vpop.f32.mrb[37].mxu1  ;;  %1341 = vmatprep.subr.bf16.mxu0 %v2625_v47  ;;  %1929 = vmatprep.subr.bf16.mxu1 %v2625_v47 }
 0x164   :  { %v1254_v4 = vpack.c.bf16 %v1218_v22, %v1217_v11  ;;  %v1167_v5 = vmax.f32 %v827_v27, %v1081_v28  ;;  %v1839_v30 = vpop.f32.mrb[38].mxu0  ;;  %v1883_v31 = vpop.f32.mrb[38].mxu1  ;;  %v2632_v22 = vmax.f32 %v2351_v48, %v2353_v49 }
 0x165   :  { %v1196_v24 = vmax.f32 %v2627_v35, %v1169_v3  ;;  %v1170_v6 = vmax.f32 %v1839_v30, %v1883_v31  ;;  %v830_v7 = vpop.f32.mrb[39].mxu0  ;;  %v1084_v0 = vpop.f32.mrb[39].mxu1 }
 0x166   :  { %v1194_v17 = vmax.f32 %v2628_v38, %v1167_v5  ;;  %v1168_v32 = vmax.f32 %v830_v7, %v1084_v0  ;;  %1342 = vmatpush1.bf16.msra.mxu0 %v1254_v4  ;;  %1943 = vmatpush1.bf16.msra.mxu1 %v1254_v4 }
 0x167   :  { %v1197_v10 = vmax.f32 %v2629_v9, %v1170_v6  ;;  %1343 = vmatprep.subr.bf16.mxu0 %v2625_v47  ;;  %1930 = vmatprep.subr.bf16.mxu1 %v2625_v47  ;;  %v1223_v12 = vmax.f32 %v1196_v24, 0.0  ;;  %v2635_v6 = vmax.f32 %v2369_v57, %v2371_v58  ;;  %v2638_v57 = vmax.f32 %v2387_v15, %v2389_v18 }
 0x168   :  { %v1195_v34 = vmax.f32 %v2630_v33, %v1168_v32  ;;  %v1221_v41 = vmax.f32 %v1194_v17, 0.0  ;;  %v2636_v32 = vmax.f32 %v2375_v60, %v2377_v61  ;;  %v2637_v33 = vmax.f32 %v2381_v63, %v2383_v1 }
 0x169   :  { %v1224_v13 = vmax.f32 %v1197_v10, 0.0 }
 0x16a   :  { %v1222_v36 = vmax.f32 %v1195_v34, 0.0  ;;  %v1842_v37 = vpop.f32.mrb[40].mxu0  ;;  %v1886_v44 = vpop.f32.mrb[40].mxu1  ;;  %1344 = vmatpush1.bf16.msra.mxu0 %v1255_v2  ;;  %1944 = vmatpush1.bf16.msra.mxu1 %v1255_v2  ;;  %v2633_v2 = vmax.f32 %v2357_v51, %v2359_v52 }
 0x16b   :  { %v1257_v62 = vpack.c.bf16 %v1224_v13, %v1223_v12  ;;  %v1173_v29 = vmax.f32 %v1842_v37, %v1886_v44  ;;  %v843_v39 = vpop.f32.mrb[41].mxu0  ;;  %v1097_v40 = vpop.f32.mrb[41].mxu1  ;;  %1345 = vmatprep.subr.bf16.mxu0 %v2625_v47  ;;  %1931 = vmatprep.subr.bf16.mxu1 %v2625_v47 }
 0x16c   :  { %v1256_v16 = vpack.c.bf16 %v1222_v36, %v1221_v41  ;;  %v1171_v21 = vmax.f32 %v843_v39, %v1097_v40  ;;  %v1843_v42 = vpop.f32.mrb[42].mxu0  ;;  %v1887_v43 = vpop.f32.mrb[42].mxu1  ;;  %v2639_v39 = vmax.f32 %v2393_v25, %v2395_v59  ;;  %v2643_v59 = vld [vmem:[#allocation14_spill] sm:$0xff]  ;;  %v2644_v25 = vld [vmem:[#allocation15_spill] sm:$0xff] }
 0x16d   :  { %v1200_v20 = vmax.f32 %v2631_v19, %v1173_v29  ;;  %v1174_v26 = vmax.f32 %v1843_v42, %v1887_v43  ;;  %v846_v8 = vpop.f32.mrb[43].mxu0  ;;  %v1100_v11 = vpop.f32.mrb[43].mxu1  ;;  %v2640_v43 = vmax.f32 %v2399_v56, %v2401_v53 }
 0x16e   :  { %v1198_v23 = vmax.f32 %v2632_v22, %v1171_v21  ;;  %v1172_v14 = vmax.f32 %v846_v8, %v1100_v11  ;;  %1346 = vmatpush1.bf16.msra.mxu0 %v1256_v16  ;;  %1945 = vmatpush1.bf16.msra.mxu1 %v1256_v16  ;;  %v2645_v22 = vmax.f32 %v2643_v59, %v2644_v25 }
 0x16f   :  { %v1201_v3 = vmax.f32 %v2633_v2, %v1174_v26  ;;  %1347 = vmatprep.subr.bf16.mxu0 %v2625_v47  ;;  %1932 = vmatprep.subr.bf16.mxu1 %v2625_v47  ;;  %v1227_v27 = vmax.f32 %v1200_v20, 0.0  ;;  %v2641_v26 = vld [vmem:[#allocation13_spill] sm:$0xff] }
 0x170   :  { %v1199_v46 = vmax.f32 %v2634_v45, %v1172_v14  ;;  %v1225_v4 = vmax.f32 %v1198_v23, 0.0  ;;  %v2642_v8 = vmax.f32 %v2405_v50, %v2641_v26 }
 0x171   :  { %v1228_v28 = vmax.f32 %v1201_v3, 0.0 }
 0x172   :  { %v1226_v48 = vmax.f32 %v1199_v46, 0.0  ;;  %v1846_v49 = vpop.f32.mrb[44].mxu0  ;;  %v1890_v5 = vpop.f32.mrb[44].mxu1  ;;  %1348 = vmatpush1.bf16.msra.mxu0 %v1257_v62  ;;  %1946 = vmatpush1.bf16.msra.mxu1 %v1257_v62 }
 0x173   :  { %v1259_v30 = vpack.c.bf16 %v1228_v28, %v1227_v27  ;;  %v1177_v31 = vmax.f32 %v1846_v49, %v1890_v5  ;;  %v859_v51 = vpop.f32.mrb[45].mxu0  ;;  %v1113_v52 = vpop.f32.mrb[45].mxu1  ;;  %1349 = vmatprep.subr.bf16.mxu0 %v2625_v47  ;;  %1933 = vmatprep.subr.bf16.mxu1 %v2625_v47 }
 0x174   :  { %v1258_v35 = vpack.c.bf16 %v1226_v48, %v1225_v4  ;;  %v1175_v24 = vmax.f32 %v859_v51, %v1113_v52  ;;  %v1847_v54 = vpop.f32.mrb[46].mxu0  ;;  %v1891_v55 = vpop.f32.mrb[46].mxu1 }
 0x175   :  { %v1204_v7 = vmax.f32 %v2635_v6, %v1177_v31  ;;  %v1178_v0 = vmax.f32 %v1847_v54, %v1891_v55  ;;  %v862_v38 = vpop.f32.mrb[47].mxu0  ;;  %v1116_v17 = vpop.f32.mrb[47].mxu1  ;;  %v2647_v31 = vld [vmem:[#allocation17_spill] sm:$0xff]  ;;  %v2649_v54 = vld [vmem:[#allocation18_spill] sm:$0xff]  ;;  %v2650_v55 = vld [vmem:[#allocation19_spill] sm:$0xff] }
 0x176   :  { %v1202_v9 = vmax.f32 %v2636_v32, %v1175_v24  ;;  %v1176_v10 = vmax.f32 %v862_v38, %v1116_v17  ;;  %1350 = vmatpush1.bf16.msra.mxu0 %v1258_v35  ;;  %1947 = vmatpush1.bf16.msra.mxu1 %v1258_v35  ;;  %v2651_v6 = vmax.f32 %v2649_v54, %v2650_v55  ;;  %v2652_v38 = vld [vmem:[#allocation20_spill] sm:$0xff]  ;;  %v2653_v17 = vld [vmem:[#allocation21_spill] sm:$0xff] }
 0x177   :  { %v1205_v34 = vmax.f32 %v2637_v33, %v1178_v0  ;;  %1351 = vmatprep.subr.bf16.mxu0 %v2625_v47  ;;  %1934 = vmatprep.subr.bf16.mxu1 %v2625_v47  ;;  %v1231_v12 = vmax.f32 %v1204_v7, 0.0  ;;  %v2654_v32 = vmax.f32 %v2652_v38, %v2653_v17 }
 0x178   :  { %v1203_v58 = vmax.f32 %v2638_v57, %v1176_v10  ;;  %v1229_v41 = vmax.f32 %v1202_v9, 0.0 }
 0x179   :  { %v1232_v13 = vmax.f32 %v1205_v34, 0.0 }
 0x17a   :  { %v1230_v60 = vmax.f32 %v1203_v58, 0.0  ;;  %v1850_v61 = vpop.f32.mrb[48].mxu0  ;;  %v1894_v36 = vpop.f32.mrb[48].mxu1  ;;  %1352 = vmatpush1.bf16.msra.mxu0 %v1259_v30  ;;  %1948 = vmatpush1.bf16.msra.mxu1 %v1259_v30  ;;  %v2646_v30 = vld [vmem:[#allocation16_spill] sm:$0xff] }
 0x17b   :  { %v1261_v37 = vpack.c.bf16 %v1232_v13, %v1231_v12  ;;  %v1181_v44 = vmax.f32 %v1850_v61, %v1894_v36  ;;  %v875_v63 = vpop.f32.mrb[49].mxu0  ;;  %v1129_v1 = vpop.f32.mrb[49].mxu1  ;;  %1353 = vmatprep.subr.bf16.mxu0 %v2625_v47  ;;  %1935 = vmatprep.subr.bf16.mxu1 %v2625_v47  ;;  %v2648_v51 = vmax.f32 %v2646_v30, %v2647_v31  ;;  %v2037_v13 = vld [vmem:[%s2588_s3] ss:$8 sps:$4 sm:$0xff]   ;;  %v2123_v36 = vmov 1  }
 0x17c   :  { %v1260_v62 = vpack.c.bf16 %v1230_v60, %v1229_v41  ;;  %v1179_v29 = vmax.f32 %v875_v63, %v1129_v1  ;;  %v1851_v15 = vpop.f32.mrb[50].mxu0  ;;  %v1895_v18 = vpop.f32.mrb[50].mxu1  ;;  %v2040_v41 = vld [vmem:[%s2588_s3 + $0x10] ss:$8 sps:$4 sm:$0xff]   ;;  %v2043_v60 = vld [vmem:[%s2588_s3 + $0x24] ss:$8 sps:$4 sm:$0xff]   ;;  %1968 = vset.pattern.permute.xlu1 %v2123_v36  ;;  %1967 = vset.pattern.permute.xlu0 %v2123_v36 }
 0x17d   :  { %v1208_v40 = vmax.f32 %v2639_v39, %v1181_v44  ;;  %v1182_v16 = vmax.f32 %v1851_v15, %v1895_v18  ;;  %v878_v21 = vpop.f32.mrb[51].mxu0  ;;  %v1132_v42 = vpop.f32.mrb[51].mxu1  ;;  %v1401_v61 = vld [vmem:[%s2590_s5] sm:$0xff]  ;;  %v2656_v44 = vld [vmem:[#allocation11_spill] sm:$0xff]  ;;  %v2124_v63 = vmov 2   ;;  %v2125_v1 = vmov 3  }
 0x17e   :  { %v1206_v19 = vmax.f32 %v2640_v43, %v1179_v29  ;;  %v1180_v20 = vmax.f32 %v878_v21, %v1132_v42  ;;  %1354 = vmatpush1.bf16.msra.mxu0 %v1260_v62  ;;  %1949 = vmatpush1.bf16.msra.mxu1 %v1260_v62  ;;  %v2126_v62 = vmov 4   ;;  %v1269_v29 = vpop.permute.xlu0 %1268  ;;  %v1279_v15 = vpop.permute.xlu1 %1278  ;;  %v1402_v31 = vld [vmem:[%s2590_s5 + $0x8] sm:$0xff] }
 0x17f   :  { %v1209_v11 = vmax.f32 %v2642_v8, %v1182_v16  ;;  %1355 = vmatprep.subr.bf16.mxu0 %v2625_v47  ;;  %1936 = vmatprep.subr.bf16.mxu1 %v2625_v47  ;;  %v1235_v14 = vmax.f32 %v1208_v40, 0.0 }
 0x180   :  { %v1207_v23 = vmax.f32 %v2645_v22, %v1180_v20  ;;  %v1233_v3 = vmax.f32 %v1206_v19, 0.0  ;;  %1404 = vperm.xlu0 %1967, %v2656_v44  }
 0x181   :  { %v1236_v2 = vmax.f32 %v1209_v11, 0.0 }
 0x182   :  { %v1234_v53 = vmax.f32 %v1207_v23, 0.0  ;;  %v1854_v56 = vpop.f32.mrb[52].mxu0  ;;  %v1898_v45 = vpop.f32.mrb[52].mxu1  ;;  %1356 = vmatpush1.bf16.msra.mxu0 %v1261_v37  ;;  %1950 = vmatpush1.bf16.msra.mxu1 %v1261_v37  ;;  %v2655_v37 = vld [vmem:[#allocation12_spill] sm:$0xff] }
 0x183   :  { %v1263_v46 = vpack.c.bf16 %v1236_v2, %v1235_v14  ;;  %v1185_v27 = vmax.f32 %v1854_v56, %v1898_v45  ;;  %v891_v50 = vpop.f32.mrb[53].mxu0  ;;  %v1145_v28 = vpop.f32.mrb[53].mxu1  ;;  %1357 = vmatprep.subr.bf16.mxu0 %v2625_v47  ;;  %1937 = vmatprep.subr.bf16.mxu1 %v2625_v47 }
 0x184   :  { %v1262_v4 = vpack.c.bf16 %v1234_v53, %v1233_v3  ;;  %v1183_v48 = vmax.f32 %v891_v50, %v1145_v28  ;;  %v1855_v49 = vpop.f32.mrb[54].mxu0  ;;  %v1899_v5 = vpop.f32.mrb[54].mxu1  ;;  %1408 = vperm.xlu1 %1968, %v2655_v37   ;;  %1970 = vset.pattern.permute.xlu0 %v2124_v63 }
 0x185   :  { %v1212_v52 = vmax.f32 %v2648_v51, %v1185_v27  ;;  %v894_v35 = vpop.f32.mrb[55].mxu0  ;;  %v1148_v24 = vpop.f32.mrb[55].mxu1  ;;  %1506 = vperm.xlu0 %1970, %v2655_v37  }
 0x186   :  { %v1210_v7 = vmax.f32 %v2651_v6, %v1183_v48  ;;  %v1184_v0 = vmax.f32 %v894_v35, %v1148_v24  ;;  %1358 = vmatpush1.bf16.msra.mxu0 %v1262_v4  ;;  %1951 = vmatpush1.bf16.msra.mxu1 %v1262_v4  ;;  %v1274_v18 = vpop.permute.xlu0 %1273  ;;  %v1284_v39 = vpop.permute.xlu1 %1283  ;;  %v1625_v24 = vld [vmem:[%s2586_s1] ss:$0 sm:$0xff]  ;;  %s2127_s1 = smov [#allocation7]  }
 0x187   :  { %1359 = vmatprep.subr.bf16.mxu0 %v2625_v47  ;;  %1938 = vmatprep.subr.bf16.mxu1 %v2625_v47  ;;  %v1239_v10 = vmax.f32 %v1212_v52, 0.0  ;;  %s1542_s5 = sshll.u32 %s2127_s1, 4  ;;  %s1543_s5 = int_to_ptr.vmem [resolvable:$true] %s1542_s5 }
 0x188   :  { %v1211_v9 = vmax.f32 %v2654_v32, %v1184_v0  ;;  %v1237_v33 = vmax.f32 %v1210_v7, 0.0  ;;  %1969 = vset.pattern.permute.xlu1 %v2124_v63  ;;  %s2090_s23 = scalar_lea.vmem %s1543_s5, 16  ;;  %s2094_s24 = scalar_lea.vmem %s1543_s5, 32 }
 0x189   :  { %v1265_v58 = vpack.c.bf16 %v1239_v10, %v1239_v10  ;;  %1502 = vperm.xlu1 %1969, %v2656_v44   ;;  %1972 = vset.pattern.permute.xlu0 %v2126_v62  ;;  %p2091_p2 = scmp.ne.s32.totalorder %s1543_s5, %s2090_s23  ;;  %p2095_p3 = scmp.lt.s32.totalorder %s1543_s5, %s1543_s5 }
 0x18a   :  { %v1238_v34 = vmax.f32 %v1211_v9, 0.0  ;;  %1360 = vmatpush1.bf16.msra.mxu0 %v1263_v46  ;;  %1952 = vmatpush1.bf16.msra.mxu1 %v1263_v46  ;;  %v1289_v56 = vpop.permute.xlu0 %1288  ;;  %v1294_v50 = vpop.permute.xlu1 %1293  ;;  %p2096_p4 = scmp.lt.s32.totalorder %s2094_s24, %s2090_s23 }
 0x18b   :  { %1361 = vmatprep.subr.bf16.mxu0 %v2625_v47  ;;  %1939 = vmatprep.subr.bf16.mxu1 %v2625_v47  ;;  %v1335_v12 = vsel %vm1333_vm1, %v1265_v58, 0 }
 0x18c   :  { %v1264_v57 = vpack.c.bf16 %v1238_v34, %v1237_v33  ;;  %1531 = vperm.xlu0 %1972, %v2656_v44   ;;  %p2097_p5 = por %p2096_p4, %p2095_p3 }
 0x18d   :  { %1971 = vset.pattern.permute.xlu1 %v2125_v1 }
 0x18e   :  { %1362 = vmatpush1.bf16.msra.mxu0 %v1264_v57  ;;  %1953 = vmatpush1.bf16.msra.mxu1 %v1264_v57  ;;  %p2098_p6 = pnand %p2097_p5, %p2091_p2 }
 0x18f   :  { %1363 = vmatprep.subr.bf16.mxu0 %v2625_v47  ;;  %1940 = vmatprep.subr.bf16.mxu1 %v2625_v47  ;;  %v2045_v47 = vld [vmem:[%s2588_s3 + $0x20] ss:$8 sps:$4 sm:$0xff]  }
 0x190   :  { %1514 = vperm.xlu1 %1971, %v2656_v44  }
 0x192   :  { %1364 = vmatpush1.bf16.msra.mxu0 %v1335_v12  ;;  %1954 = vmatpush1.bf16.msra.mxu1 %v1335_v12 }
 0x194   :  { %1518 = vperm.xlu1 %1971, %v2655_v37  }
 0x195   :  { %1370 = vmatmul.mubr.bf16.vlgmr.msra.gmra.mrb[56].mxu0 %v2037_v13  ;;  %1378 = vmatmul.mubr.bf16.vlgmr.msra.gmra.mrb[56].mxu1 %v2040_v41 }
 0x196   :  { %1624 = vmatprep.mubr.msk.bf16.mxu1 %vm1323_vm0, %v2043_v60  ;;  %1912 = vmatprep.mubr.msk.f32.mxu0 %vm1419_vm2, %v1401_v61 }
 0x19d   :  { %1386 = vmatmul.mubr.bf16.gmra.mrb[60].mxu1 %v2045_v47 }
 0x1ff   :  { %v1405_v35 = vpop.permute.xlu0 %1404 }
 0x200   :  { %v1417_v54 = vmul.f32 %v1625_v24, %v1405_v35 }
 0x203   :  { %v1409_v51 = vpop.permute.xlu1 %1408 }
 0x204   :  { %v1418_v55 = vmul.f32 %v1625_v24, %v1409_v51  ;;  %v1507_v0 = vpop.permute.xlu0 %1506 }
 0x208   :  { %v1503_v52 = vpop.permute.xlu1 %1502 }
 0x20b   :  { %v1532_v37 = vpop.permute.xlu0 %1531 }
 0x20f   :  { %v1515_v6 = vpop.permute.xlu1 %1514 }
 0x213   :  { %v1519_v57 = vpop.permute.xlu1 %1518 }
 0x268   :  { %v1371_v40 = vpop.f32.mrb[56].mxu0  ;;  %v1379_v16 = vpop.f32.mrb[56].mxu1 }
 0x269   :  { %v1372_v21 = vadd.f32 %v1371_v40, %v1269_v29  ;;  %v1380_v42 = vadd.f32 %v1379_v16, %v1279_v15  ;;  %v1373_v43 = vpop.f32.mrb[57].mxu0  ;;  %v1381_v19 = vpop.f32.mrb[57].mxu1 }
 0x26a   :  { %v1374_v20 = vpop.f32.mrb[58].mxu0  ;;  %v1382_v26 = vpop.f32.mrb[58].mxu1 }
 0x26b   :  { %v1375_v8 = vadd.f32 %v1374_v20, %v1274_v18  ;;  %v1383_v11 = vadd.f32 %v1382_v26, %v1284_v39  ;;  %v1376_v59 = vpop.f32.mrb[59].mxu0  ;;  %v1384_v25 = vpop.f32.mrb[59].mxu1  ;;  %v1394_v22 = vmax.f32 %v1372_v21, 0.0  ;;  %v1396_v23 = vmax.f32 %v1380_v42, 0.0 }
 0x26d   :  { %v1395_v14 = vmax.f32 %v1375_v8, 0.0  ;;  %v1397_v2 = vmax.f32 %v1383_v11, 0.0 }
 0x26f   :  { %v1915_v3 = vpack.c.bf16 %v1395_v14, %v1394_v22  ;;  %v1919_v53 = vpack.c.bf16 %v1397_v2, %v1396_v23 }
 0x270   :  { %v1387_v45 = vpop.f32.mrb[60].mxu1 }
 0x271   :  { %v1388_v46 = vadd.f32 %v1387_v45, %v1289_v56  ;;  %v1389_v27 = vpop.f32.mrb[61].mxu1  ;;  %1916 = vmatprep.subr.bf16.mxu0 %v1915_v3 }
 0x272   :  { %v1390_v28 = vpop.f32.mrb[62].mxu1  ;;  %1918 = vmatpush3.bf16.msra.mxu0 %v1915_v3 }
 0x273   :  { %v1391_v4 = vadd.f32 %v1390_v28, %v1294_v50  ;;  %v1392_v48 = vpop.f32.mrb[63].mxu1  ;;  %1920 = vmatprep.subr.bf16.mxu0 %v1919_v53  ;;  %v1398_v49 = vmax.f32 %v1388_v46, 0.0 }
 0x275   :  { %v1399_v5 = vmax.f32 %v1391_v4, 0.0 }
 0x276   :  { %1922 = vmatpush3.bf16.msra.mxu0 %v1919_v53 }
 0x277   :  { %v1923_v30 = vpack.c.bf16 %v1399_v5, %v1398_v49 }
 0x279   :  { %1924 = vmatprep.subr.bf16.mxu0 %v1923_v30 }
 0x27a   :  { %1926 = vmatpush3.bf16.msra.mxu0 %v1923_v30 }
 0x27d   :  { %1913 = vmatmul.mubr.msk.f32.vlgmr.msra.gmra.mrb[60].mxu0 %vm1419_vm2, %v1402_v31 }
 0x350   :  { %v1914_v7 = vpop.f32.mrb[60].mxu0 }
 0x351   :  { %v1498_v38 = vadd.f32 %v1914_v7, %v1418_v55  ;;  %v1492_v17 = vpop.f32.mrb[61].mxu0 }
 0x352   :  { %v1493_v32 = vadd.f32 %v1492_v17, %v1417_v54 }
 0x353   :  { %v1510_v9 = vadd.f32 %v1507_v0, %v1498_v38 }
 0x354   :  { %v1509_v10 = vadd.f32 %v1503_v52, %v1493_v32 }
 0x355   :  { %v1512_v33 = vmax.f32 %v1510_v9, 0.0 }
 0x356   :  { %v1511_v34 = vmax.f32 %v1509_v10, 0.0 }
 0x357   :  { %v1522_v58 = vmul.f32 %v1519_v57, %v1512_v33 }
 0x358   :  { %v1521_v12 = vmul.f32 %v1515_v6, %v1511_v34 }
 0x35a   :  { %v1523_v13 = vadd.f32 %v1522_v58, %v1521_v12 }
 0x35c   :  { %v1524_v41 = vrot.slane %v1523_v13, 4 }
 0x35e   :  { %v1525_v60 = vadd.f32 %v1524_v41, %v1523_v13 }
 0x360   :  { %v1526_v47 = vrot.slane %v1525_v60, 2 }
 0x362   :  { %v1527_v61 = vadd.f32 %v1526_v47, %v1525_v60 }
 0x364   :  { %v1528_v36 = vrot.slane %v1527_v61, 1 }
 0x366   :  { %v1529_v44 = vadd.f32 %v1528_v36, %v1527_v61 }
 0x368   :  { %v1534_v63 = vadd.f32 %v1532_v37, %v1529_v44 }
 0x36a   :  { %1535 = vst [vmem:[#allocation7] sm:$0x1] %v1534_v63 }
 0x36b   :  { %2101 = shalt.err (!%p2098_p6)
}
 0x36c   :  { %s2102_s27 = scalar_lea.hbm %s2591_s6, 16 }
 0x36d   :  { %p2103_p7 = scmp.ne.s32.totalorder %s2591_s6, %s2102_s27  ;;  %p2106_p8 = scmp.lt.u32.totalorder %s2102_s27, %s2591_s6 }
 0x36f   :  { %p2108_p9 = pnand %p2106_p8, %p2103_p7 }
 0x371   :  { %2111 = shalt.err (!%p2108_p9)
}
 0x372   :  { %1545 = dma.vmem_to_hbm [thread:$0]  %s1543_s5, 16, %s2591_s6, [#allocation4]  }
 0x373   :  { %2116 = dma.done.wait [#allocation4], 16  }
 0x374   :  { %2117 = vsyncadd [#allocation4], 4294967280 }
 0x375   :  { %1549 = vsyncpa [#allocation3], 1 }
 0x376   :  { %1550 = vsyncpa [#allocation6], 1 }
 0x377   :  { %1551 = vsyncpa [#allocation4], 1 }

</bundles_post_ra>
